<compile_context>
chip_gen: v7x
topology: tpu7x:2x2x1
jax: 0.10.0
libtpu: 0.0.40
codegen_flags: <defaults>
</compile_context>

<pallas_src>
import jax
import jax.numpy as jnp
from jax.experimental import pallas as pl
from jax.experimental.pallas import tpu as pltpu


def _copy_kernel(x_ref, o_ref):
    # Pure copy: x_ref is the channel-0 window of the current block.
    o_ref[...] = x_ref[...]


_BLOCK_BYTES_BUDGET = 2 * 1024 * 1024  # ~2 MiB per block (4 buffers -> ~8 MiB)


def _s2m_fir_lane_dense(x2, hw, bn):
    """Copy columns [0:hw) (channel 0) of x2:(n, C*hw) into an (n, hw) output."""
    n = x2.shape[0]
    grid = (n // bn,)
    return pl.pallas_call(
        _copy_kernel,
        out_shape=jax.ShapeDtypeStruct((n, hw), x2.dtype),
        grid=grid,
        # Block index 0 along the last axis selects elements [0:hw) == channel 0.
        in_specs=[pl.BlockSpec((bn, hw), lambda i: (i, 0))],
        out_specs=pl.BlockSpec((bn, hw), lambda i: (i, 0)),
        compiler_params=pltpu.CompilerParams(
            dimension_semantics=("parallel",)
        ),
    )(x2)


def _s2m_fir_nchw(x):
    """Fallback when H*W is not a multiple of 128: full (1,1,H,W) blocks per
    batch element (satisfies the (8,128) rule via the full-extent escape
    hatch). Correct but not lane-dense; only used off the fast path."""
    N, C, H, W = x.shape
    return pl.pallas_call(
        _copy_kernel,
        out_shape=jax.ShapeDtypeStruct((N, 1, H, W), x.dtype),
        grid=(N,),
        in_specs=[pl.BlockSpec((1, 1, H, W), lambda n: (n, 0, 0, 0))],
        out_specs=pl.BlockSpec((1, 1, H, W), lambda n: (n, 0, 0, 0)),
        compiler_params=pltpu.CompilerParams(
            dimension_semantics=("parallel",)
        ),
    )(x)


def s2m_fir(x):
    """Pallas implementation of S2M_FIR.forward: returns x[:, 0:1, :, :]."""
    N, C, H, W = x.shape
    hw = H * W

    if hw % 128 != 0:
        # Awkward spatial size: take the slower but correct NCHW-blocked path.
        return _s2m_fir_nchw(x)

    itemsize = jnp.dtype(x.dtype).itemsize
    if N <= 8:
        # Use the full batch extent (escape hatch for the sublane-of-8 rule).
        bn = N
    else:
        rows_by_budget = max(8, (_BLOCK_BYTES_BUDGET // (hw * itemsize)) // 8 * 8)
        bn = min(rows_by_budget, (N // 8) * 8)
    n_main = (N // bn) * bn

    # NCHW is contiguous, so channel 0 of batch n is columns [0:hw) of row n.
    x2 = x.reshape(N, C * hw)
    out_main = _s2m_fir_lane_dense(x2[:n_main], hw, bn)
    if n_main < N:
        # Batch remainder: plain XLA slice (copy-only, negligible) so the
        # kernel's hot path keeps large unmasked tiles.
        out_flat = jnp.concatenate([out_main, x2[n_main:, :hw]], axis=0)
    else:
        out_flat = out_main
    return out_flat.reshape(N, 1, H, W)


if __name__ == "__main__":
    key = jax.random.PRNGKey(0)
    # Small NCHW input consistent with the module: batch=2, channels=4, 16x16.
    x = jax.random.normal(key, (2, 4, 16, 16), dtype=jnp.float32)

    out = s2m_fir(x)
    out = jax.block_until_ready(out)

    # Reference check against plain JAX slicing (== torch semantics).
    ref = x[:, 0:1, :, :]
    assert out.shape == (2, 1, 16, 16), out.shape
    assert out.dtype == x.dtype
    assert jnp.array_equal(out, ref), "mismatch vs reference slice"

    print("KERNEL_OK")
</pallas_src>

<mosaic_0001>
module attributes {stable_mosaic.version = 11 : i64} {
  func.func @_copy_kernel(%arg0: i32, %arg1: memref<2x256xf32, #tpu.memory_space<vmem>>, %arg2: memref<2x256xf32, #tpu.memory_space<vmem>>) attributes {dimension_semantics = [#tpu.dimension_semantics<parallel>], iteration_bounds = array<i64: 1>, scalar_prefetch = 0 : i64, scratch_operands = 0 : i64, tpu.core_type = #tpu.core_type<tc>, window_params = [{transform_indices = @transform_0, window_bounds = array<i64: 2, 256>}, {transform_indices = @transform_1, window_bounds = array<i64: 2, 256>}]} {
    %c0 = arith.constant 0 : index
    %c0_0 = arith.constant 0 : index
    %0 = vector.load %arg1[%c0, %c0_0] : memref<2x256xf32, #tpu.memory_space<vmem>>, vector<2x256xf32>
    %c0_1 = arith.constant 0 : index
    %c0_2 = arith.constant 0 : index
    %1 = vector.load %arg2[%c0_1, %c0_2] : memref<2x256xf32, #tpu.memory_space<vmem>>, vector<2x256xf32>
    tpu.vector_store %arg2[%c0_1, %c0_2], %0 {strides = array<i32>} : memref<2x256xf32, #tpu.memory_space<vmem>>, vector<2x256xf32>,
    return
  }
  func.func @transform_0(%arg0: i32) -> (i32, i32) {
    %c0_i32 = arith.constant 0 : i32
    %c0_i32_0 = arith.constant 0 : i32
    return %arg0, %c0_i32 : i32, i32
  }
  func.func @transform_1(%arg0: i32) -> (i32, i32) {
    %c0_i32 = arith.constant 0 : i32
    %c0_i32_0 = arith.constant 0 : i32
    return %arg0, %c0_i32 : i32, i32
  }
}

</mosaic_0001>

<bundles_post_ra>
// kernel: tpu_custom_call.1
= control target key start
LH: loop header
LB: loop body
LE: loop exit
PB: predicated region body
PF: predicated region fallthrough
CT: control target
= control target key end

     0   :  { %6 = vsyncpa [#allocation3], 0  ;;  %s127_s0 = inlined_call_operand.hbm [shape: f32[2,1024], index: 0, kind: input, shape index: {}]   ;;  %s128_s1 = inlined_call_operand.hbm [shape: f32[2,256], index: 1, kind: output, shape index: {}]  }
   0x1   :  { %7 = vsyncpa [#allocation4], 0  ;;  %s88_s6 = smov [#allocation2]   ;;  %s40_s10 = scalar_lea.hbm %s127_s0, 64 }
   0x2   :  { %s14_s7 = sshll.u32 %s88_s6, 4  ;;  %p41_p0 = scmp.ne.s32.totalorder %s127_s0, %s40_s10  ;;  %s15_s7 = int_to_ptr.vmem [resolvable:$true] %s14_s7 }
   0x3   :  { %s42_s15 = scalar_lea.hbm %s127_s0, 256  ;;  %p44_p2 = scmp.lt.u32.totalorder %s40_s10, %s127_s0 }
   0x4   :  { %p43_p1 = scmp.lt.u32.totalorder %s42_s15, %s40_s10 }
   0x6   :  { %p45_p3 = por %p44_p2, %p43_p1 }
   0x8   :  { %p46_p4 = pnand %p45_p3, %p41_p0 }
   0xa   :  { %49 = shalt.err (!%p46_p4)
}
   0xb   :  { %s50_s18 = scalar_lea.vmem %s15_s7, 64  ;;  %p55_p6 = scmp.lt.s32.totalorder %s15_s7, %s15_s7 }
   0xc   :  { %p51_p5 = scmp.ne.s32.totalorder %s15_s7, %s50_s18  ;;  %p56_p7 = scmp.lt.s32.totalorder %s50_s18, %s50_s18 }
   0xe   :  { %p57_p8 = por %p56_p7, %p55_p6 }
  0x10   :  { %p58_p9 = pnand %p57_p8, %p51_p5 }
  0x12   :  { %61 = shalt.err (!%p58_p9)
}
  0x13   :  { %17 = dma.hbm_to_vmem [thread:$0]  %s127_s0, 64, %s15_s7, [#allocation3]  }
  0x14   :  { %84 = dma.done.wait [#allocation3], 64  }
  0x15   :  { %85 = vsyncadd [#allocation3], 4294967232  ;;  %s89_s21 = smov [#allocation5]   ;;  %v21_v0 = vld [vmem:[#allocation2] sm:$0xf] }
  0x16   :  { %s29_s22 = sshll.u32 %s89_s21, 4  ;;  %22 = vst [vmem:[#allocation5] sm:$0xf] %v21_v0  ;;  %s30_s22 = int_to_ptr.vmem [resolvable:$true] %s29_s22 }
  0x17   :  { %s62_s23 = scalar_lea.vmem %s30_s22, 64  ;;  %p67_p11 = scmp.lt.s32.totalorder %s30_s22, %s30_s22 }
  0x18   :  { %p63_p10 = scmp.ne.s32.totalorder %s30_s22, %s62_s23  ;;  %p68_p12 = scmp.lt.s32.totalorder %s62_s23, %s62_s23 }
  0x1a   :  { %p69_p13 = por %p68_p12, %p67_p11 }
  0x1c   :  { %p70_p0 = pnand %p69_p13, %p63_p10 }
  0x1e   :  { %73 = shalt.err (!%p70_p0)
}
  0x1f   :  { %s74_s26 = scalar_lea.hbm %s128_s1, 64 }
  0x20   :  { %p75_p1 = scmp.ne.s32.totalorder %s128_s1, %s74_s26  ;;  %p78_p2 = scmp.lt.u32.totalorder %s74_s26, %s128_s1 }
  0x22   :  { %p80_p3 = pnand %p78_p2, %p75_p1 }
  0x24   :  { %83 = shalt.err (!%p80_p3)
}
  0x25   :  { %32 = dma.vmem_to_hbm [thread:$0]  %s30_s22, 64, %s128_s1, [#allocation4]  }
  0x26   :  { %86 = dma.done.wait [#allocation4], 64  }
  0x27   :  { %87 = vsyncadd [#allocation4], 4294967232 }
  0x28   :  { %36 = vsyncpa [#allocation3], 1 }
  0x29   :  { %37 = vsyncpa [#allocation4], 1 }

</bundles_post_ra>
